<compile_context>
chip_gen: v7x
topology: tpu7x:2x2x1
jax: 0.10.0
libtpu: 0.0.40
codegen_flags: <defaults>
</compile_context>

<pallas_src>
import functools
import math

import jax
import jax.numpy as jnp
import numpy as np
from jax.experimental import pallas as pl
from jax.experimental.pallas import tpu as pltpu


# ---------------------------------------------------------------------------
# Pallas kernel: one fused stage-1 GEMM on a (TB*H, W) slab, then TB small
# per-image stage-2 GEMMs on aligned row blocks (no block-diagonal operators).
# ---------------------------------------------------------------------------
def _truncate_kernel(x_ref, pwqw_ref, ph_ref, qh_ref, o_ref, *, tb, h, w):
    # Stage 1 (shared across the batch tile, fused): (TB*H, W) @ (W, 2W).
    t = jnp.dot(x_ref[...], pwqw_ref[...], preferred_element_type=jnp.float32)
    t1 = t[:, :w]     # x @ P_W   (static lane slice, done once per block)
    t2 = t[:, w:]     # x @ Q_W
    ph = ph_ref[...]  # (H, H)
    qh = qh_ref[...]  # (H, H)
    # Stage 2 (per image): y_j = P_H @ t1_j + Q_H @ t2_j.
    # Static unrolled loop; row offsets j*h are sublane-aligned by construction
    # (TB is chosen so TB*H % 8 == 0 and h*j stays a multiple of h).
    for j in range(tb):
        r0 = j * h
        y = (jnp.dot(ph, t1[r0:r0 + h, :], preferred_element_type=jnp.float32) +
             jnp.dot(qh, t2[r0:r0 + h, :], preferred_element_type=jnp.float32))
        o_ref[r0:r0 + h, :] = y.astype(o_ref.dtype)


# ---------------------------------------------------------------------------
# Operator construction (host-side, float64, O(n^2) memory) + device cache.
# ---------------------------------------------------------------------------
def _trig_projectors(n, keep):
    """C[i,j] = (1/n) sum_k keep[k] cos(2 pi k (i-j)/n); S analogous with sin."""
    k = np.arange(n, dtype=np.float64)
    theta = 2.0 * np.pi * np.outer(k, k) / n          # theta[i, k] = 2 pi i k / n
    c = np.cos(theta)
    s = np.sin(theta)
    g = keep.astype(np.float64)
    cmat = ((c * g) @ c.T + (s * g) @ s.T) / n
    smat = ((s * g) @ c.T - (c * g) @ s.T) / n
    return cmat, smat


@functools.lru_cache(maxsize=None)
def _get_operators(H, W, modes1, modes2):
    """Returns device-resident f32 operators ( [P_W|Q_W], P_H, Q_H )."""
    kH = np.arange(H)
    kW = np.arange(W)
    row_keep = (kH < modes1) | (kH >= H - modes1)      # onesided kept rows
    col_keep_full = (kW < modes2) | (kW > W - modes2)  # full-spectrum columns
    col_keep_low = kW < modes2                         # onesided (low) columns

    p_h, q_h = _trig_projectors(H, row_keep)
    p_w, _ = _trig_projectors(W, col_keep_full)
    _, s_w = _trig_projectors(W, col_keep_low)
    q_w = 2.0 * s_w

    pwqw = np.concatenate([p_w, q_w], axis=1)          # (W, 2W) fused stage-1 RHS
    return (jnp.asarray(pwqw, dtype=jnp.float32),
            jnp.asarray(p_h, dtype=jnp.float32),
            jnp.asarray(q_h, dtype=jnp.float32))


# ---------------------------------------------------------------------------
# Batch-tile selection (no kron -> TB is bounded only by slab size / unroll).
# ---------------------------------------------------------------------------
def _pick_batch_tile(B, H, W, itemsize, *, max_block_bytes=2 << 20, max_unroll=32):
    # TB granularity so the (TB*H, W) block keeps sublane tiling (TB*H % 8 == 0).
    f = 8 // math.gcd(H, 8)
    per_image = max(H * W * itemsize, 1)
    cap = max(1, min(max_unroll, max_block_bytes // per_image, B))
    tb = max(f, (cap // f) * f)
    return tb


# ---------------------------------------------------------------------------
# Wrapper
# ---------------------------------------------------------------------------
def spectral_truncate(x, modes1, modes2):
    B, H, W = x.shape
    if not (1 <= modes1 <= H // 2):
        raise ValueError(f"modes1={modes1} must satisfy 1 <= modes1 <= H//2={H // 2}")
    if not (1 <= modes2 <= W // 2):
        raise ValueError(f"modes2={modes2} must satisfy 1 <= modes2 <= W//2={W // 2}")

    pwqw, ph, qh = _get_operators(H, W, modes1, modes2)

    itemsize = jnp.dtype(x.dtype).itemsize
    TB = _pick_batch_tile(B, H, W, itemsize)
    Bp = -(-B // TB) * TB                      # pad batch up to a TB multiple
    if Bp != B:
        x = jnp.pad(x, ((0, Bp - B), (0, 0), (0, 0)))
    grid = (Bp // TB,)

    # VMEM budget derived from actual block sizes (in/out double-buffered by the
    # pipeline, operators fetched once but also double-buffered), clamped so the
    # same setting is safe on v7x (64 MiB physical) as well as v5e/v6e (128 MiB).
    block_bytes = TB * H * W * itemsize
    op_bytes = (W * 2 * W + 2 * H * H) * 4
    t_bytes = TB * H * 2 * W * 4
    needed = 4 * block_bytes + 2 * op_bytes + 2 * t_bytes + (4 << 20)
    vmem_limit = int(min(max(needed, 32 << 20), 48 << 20))

    x2d = x.reshape(Bp * H, W)                 # free leading-dim merge

    kernel = functools.partial(_truncate_kernel, tb=TB, h=H, w=W)

    out2d = pl.pallas_call(
        kernel,
        out_shape=jax.ShapeDtypeStruct((Bp * H, W), x.dtype),
        grid_spec=pltpu.PrefetchScalarGridSpec(
            num_scalar_prefetch=0,
            grid=grid,
            in_specs=[
                pl.BlockSpec((TB * H, W), lambda i: (i, 0)),
                # Constant index_map -> these are DMA'd once; their footprint is
                # only O(W^2 + H^2) so default double-buffering is negligible.
                pl.BlockSpec((W, 2 * W), lambda i: (0, 0)),
                pl.BlockSpec((H, H), lambda i: (0, 0)),
                pl.BlockSpec((H, H), lambda i: (0, 0)),
            ],
            out_specs=pl.BlockSpec((TB * H, W), lambda i: (i, 0)),
        ),
        compiler_params=pltpu.CompilerParams(
            dimension_semantics=("parallel",),
            vmem_limit_bytes=vmem_limit,
        ),
    )(x2d, pwqw, ph, qh)

    return out2d.reshape(Bp, H, W)[:B]


# ---------------------------------------------------------------------------
# Pure-JAX reference with the torch module's semantics (normalization cancels).
# ---------------------------------------------------------------------------
def _reference(x, modes1, modes2):
    xf = jnp.fft.rfft2(x, axes=(-2, -1))
    out = jnp.zeros_like(xf)
    out = out.at[:, :modes1, :modes2].set(xf[:, :modes1, :modes2])
    out = out.at[:, -modes1:, :modes2].set(xf[:, -modes1:, :modes2])
    return jnp.fft.irfft2(out, s=x.shape[-2:], axes=(-2, -1))


if __name__ == "__main__":
    key = jax.random.PRNGKey(0)
    B, H, W = 2, 16, 16
    modes1, modes2 = 4, 4
    x = jax.random.normal(key, (B, H, W), dtype=jnp.float32)

    y = spectral_truncate(x, modes1, modes2)
    y = jax.block_until_ready(y)

    y_ref = _reference(x, modes1, modes2)
    np.testing.assert_allclose(np.asarray(y), np.asarray(y_ref),
                               atol=1e-4, rtol=1e-4)
    print("KERNEL_OK")
</pallas_src>

<mosaic_0001>
module attributes {stable_mosaic.version = 11 : i64} {
  func.func @_truncate_kernel(%arg0: i32, %arg1: memref<32x16xf32, #tpu.memory_space<vmem>>, %arg2: memref<16x32xf32, #tpu.memory_space<vmem>>, %arg3: memref<16x16xf32, #tpu.memory_space<vmem>>, %arg4: memref<16x16xf32, #tpu.memory_space<vmem>>, %arg5: memref<32x16xf32, #tpu.memory_space<vmem>>) attributes {dimension_semantics = [#tpu.dimension_semantics<parallel>], iteration_bounds = array<i64: 1>, scalar_prefetch = 0 : i64, scratch_operands = 0 : i64, tpu.core_type = #tpu.core_type<tc>, window_params = [{transform_indices = @transform_0, window_bounds = array<i64: 32, 16>}, {pipeline_mode = #tpu.pipeline_mode<synchronous>, transform_indices = @transform_1, window_bounds = array<i64: 16, 32>}, {pipeline_mode = #tpu.pipeline_mode<synchronous>, transform_indices = @transform_2, window_bounds = array<i64: 16, 16>}, {pipeline_mode = #tpu.pipeline_mode<synchronous>, transform_indices = @transform_3, window_bounds = array<i64: 16, 16>}, {transform_indices = @transform_4, window_bounds = array<i64: 32, 16>}]} {
    %c0 = arith.constant 0 : index
    %c0_0 = arith.constant 0 : index
    %0 = vector.load %arg1[%c0, %c0_0] : memref<32x16xf32, #tpu.memory_space<vmem>>, vector<32x16xf32>
    %c0_1 = arith.constant 0 : index
    %c0_2 = arith.constant 0 : index
    %1 = vector.load %arg2[%c0_1, %c0_2] : memref<16x32xf32, #tpu.memory_space<vmem>>, vector<16x32xf32>
    %cst = arith.constant dense<0.000000e+00> : vector<32x32xf32>
    %2 = tpu.matmul %0, %1, %cst {dimension_numbers = #tpu.dot_dimension_numbers<[1], [0], [0], [1], [0, 0, 1, 1], [], []>} : vector<32x16xf32>, vector<16x32xf32>, vector<32x32xf32> -> vector<32x32xf32>
    %3 = vector.extract_strided_slice %2 {offsets = [0, 0], sizes = [32, 16], strides = [1, 1]} : vector<32x32xf32> to vector<32x16xf32>
    %4 = vector.extract_strided_slice %2 {offsets = [0, 16], sizes = [32, 16], strides = [1, 1]} : vector<32x32xf32> to vector<32x16xf32>
    %c0_3 = arith.constant 0 : index
    %c0_4 = arith.constant 0 : index
    %5 = vector.load %arg3[%c0_3, %c0_4] : memref<16x16xf32, #tpu.memory_space<vmem>>, vector<16x16xf32>
    %c0_5 = arith.constant 0 : index
    %c0_6 = arith.constant 0 : index
    %6 = vector.load %arg4[%c0_5, %c0_6] : memref<16x16xf32, #tpu.memory_space<vmem>>, vector<16x16xf32>
    %7 = vector.extract_strided_slice %3 {offsets = [0, 0], sizes = [16, 16], strides = [1, 1]} : vector<32x16xf32> to vector<16x16xf32>
    %cst_7 = arith.constant dense<0.000000e+00> : vector<16x16xf32>
    %8 = tpu.matmul %5, %7, %cst_7 {dimension_numbers = #tpu.dot_dimension_numbers<[1], [0], [0], [1], [0, 0, 1, 1], [], []>} : vector<16x16xf32>, vector<16x16xf32>, vector<16x16xf32> -> vector<16x16xf32>
    %9 = vector.extract_strided_slice %4 {offsets = [0, 0], sizes = [16, 16], strides = [1, 1]} : vector<32x16xf32> to vector<16x16xf32>
    %cst_8 = arith.constant dense<0.000000e+00> : vector<16x16xf32>
    %10 = tpu.matmul %6, %9, %cst_8 {dimension_numbers = #tpu.dot_dimension_numbers<[1], [0], [0], [1], [0, 0, 1, 1], [], []>} : vector<16x16xf32>, vector<16x16xf32>, vector<16x16xf32> -> vector<16x16xf32>
    %11 = arith.addf %8, %10 : vector<16x16xf32>
    %c0_9 = arith.constant 0 : index
    %c0_10 = arith.constant 0 : index
    %12 = vector.load %arg5[%c0_9, %c0_10] : memref<32x16xf32, #tpu.memory_space<vmem>>, vector<16x16xf32>
    tpu.vector_store %arg5[%c0_9, %c0_10], %11 {strides = array<i32>} : memref<32x16xf32, #tpu.memory_space<vmem>>, vector<16x16xf32>,
    %13 = vector.extract_strided_slice %3 {offsets = [16, 0], sizes = [16, 16], strides = [1, 1]} : vector<32x16xf32> to vector<16x16xf32>
    %cst_11 = arith.constant dense<0.000000e+00> : vector<16x16xf32>
    %14 = tpu.matmul %5, %13, %cst_11 {dimension_numbers = #tpu.dot_dimension_numbers<[1], [0], [0], [1], [0, 0, 1, 1], [], []>} : vector<16x16xf32>, vector<16x16xf32>, vector<16x16xf32> -> vector<16x16xf32>
    %15 = vector.extract_strided_slice %4 {offsets = [16, 0], sizes = [16, 16], strides = [1, 1]} : vector<32x16xf32> to vector<16x16xf32>
    %cst_12 = arith.constant dense<0.000000e+00> : vector<16x16xf32>
    %16 = tpu.matmul %6, %15, %cst_12 {dimension_numbers = #tpu.dot_dimension_numbers<[1], [0], [0], [1], [0, 0, 1, 1], [], []>} : vector<16x16xf32>, vector<16x16xf32>, vector<16x16xf32> -> vector<16x16xf32>
    %17 = arith.addf %14, %16 : vector<16x16xf32>
    %c16 = arith.constant 16 : index
    %c0_13 = arith.constant 0 : index
    %18 = vector.load %arg5[%c16, %c0_13] : memref<32x16xf32, #tpu.memory_space<vmem>>, vector<16x16xf32>
    tpu.vector_store %arg5[%c16, %c0_13], %17 {strides = array<i32>} : memref<32x16xf32, #tpu.memory_space<vmem>>, vector<16x16xf32>,
    return
  }
  func.func @transform_0(%arg0: i32) -> (i32, i32) {
    %c0_i32 = arith.constant 0 : i32
    %c0_i32_0 = arith.constant 0 : i32
    return %arg0, %c0_i32 : i32, i32
  }
  func.func @transform_1(%arg0: i32) -> (i32, i32) {
    %c0_i32 = arith.constant 0 : i32
    %c0_i32_0 = arith.constant 0 : i32
    %c0_i32_1 = arith.constant 0 : i32
    return %c0_i32, %c0_i32_0 : i32, i32
  }
  func.func @transform_2(%arg0: i32) -> (i32, i32) {
    %c0_i32 = arith.constant 0 : i32
    %c0_i32_0 = arith.constant 0 : i32
    %c0_i32_1 = arith.constant 0 : i32
    return %c0_i32, %c0_i32_0 : i32, i32
  }
  func.func @transform_3(%arg0: i32) -> (i32, i32) {
    %c0_i32 = arith.constant 0 : i32
    %c0_i32_0 = arith.constant 0 : i32
    %c0_i32_1 = arith.constant 0 : i32
    return %c0_i32, %c0_i32_0 : i32, i32
  }
  func.func @transform_4(%arg0: i32) -> (i32, i32) {
    %c0_i32 = arith.constant 0 : i32
    %c0_i32_0 = arith.constant 0 : i32
    return %arg0, %c0_i32 : i32, i32
  }
}

</mosaic_0001>

<bundles_post_ra>
// kernel: tpu_custom_call.1
= control target key start
LH: loop header
LB: loop body
LE: loop exit
PB: predicated region body
PF: predicated region fallthrough
CT: control target
= control target key end

     0   :  { %vm23_vm0 = vcmask 130048   ;;  %s654_s1 = inlined_call_operand.vmem [shape: f32[16,32], index: 1, kind: input, shape index: {}]   ;;  %s655_s0 = inlined_call_operand.vmem [shape: f32[32,16], index: 0, kind: input, shape index: {}]   ;;  %s656_s3 = inlined_call_operand.vmem [shape: f32[16,16], index: 3, kind: input, shape index: {}]   ;;  %s657_s2 = inlined_call_operand.vmem [shape: f32[16,16], index: 2, kind: input, shape index: {}]   ;;  %s658_s4 = inlined_call_operand.vmem [shape: f32[32,16], index: 4, kind: output, shape index: {}]  }
   0x1   :  { %v21_v0 = vld [vmem:[%s654_s1] sm:$0xff]  ;;  %v22_v1 = vld [vmem:[%s654_s1 + $0x8] sm:$0xff]  ;;  %v19_v4 = vld [vmem:[%s655_s0 + $0x10] sm:$0xff] }
   0x2   :  { %v17_v2 = vld [vmem:[%s655_s0] sm:$0xff]  ;;  %v533_v3 = vpack.c.bf16 %v22_v1, %v21_v0  ;;  %502 = vmatprep.mubr.msk.f32.mxu1 %vm23_vm0, %v19_v4  ;;  %v18_v5 = vld [vmem:[%s655_s0 + $0x8] sm:$0xff]  ;;  %v20_v6 = vld [vmem:[%s655_s0 + $0x18] sm:$0xff]  ;;  %s570_s0 = smov 112  }
   0x3   :  { %499 = vmatprep.mubr.msk.f32.mxu0 %vm23_vm0, %v17_v2  ;;  %v123_v7 = vld [vmem:[%s656_s3] sm:$0xff]  ;;  %v124_v23 = vld [vmem:[%s656_s3 + $0x8] sm:$0xff] }
   0x4   :  { %534 = vmatprep.subr.bf16.mxu0 %v533_v3  ;;  %553 = vmatprep.subr.bf16.mxu1 %v533_v3  ;;  %v121_v25 = vld [vmem:[%s657_s2] sm:$0xff]  ;;  %v122_v26 = vld [vmem:[%s657_s2 + $0x8] sm:$0xff] }
   0x5   :  { %536 = vmatpush3.bf16.msra.mxu0 %v533_v3  ;;  %554 = vmatpush3.bf16.msra.mxu1 %v533_v3 }
   0x8   :  { %500 = vmatmul.mubr.msk.f32.vlgmr.msra.gmra.mrb[0].mxu0 %vm23_vm0, %v18_v5  ;;  %503 = vmatmul.mubr.msk.f32.vlgmr.msra.gmra.mrb[0].mxu1 %vm23_vm0, %v20_v6 }
   0x9   :  { %509 = vmatprep.mubr.msk.f32.mxu1 %vm23_vm0, %v123_v7  ;;  %523 = vmatprep.mubr.msk.f32.mxu0 %vm23_vm0, %v123_v7 }
  0xdb   :  { %v501_v8 = vpop.f32.mrb[0].mxu0  ;;  %v504_v9 = vpop.f32.mrb[0].mxu1 }
  0xdc   :  { %v102_v10 = vpop.f32.mrb[1].mxu0  ;;  %v112_v11 = vpop.f32.mrb[1].mxu1 }
  0xdd   :  { %v541_v12 = vpack.c.bf16 %v501_v8, %v102_v10  ;;  %v565_v13 = vpack.i.bf16 %v504_v9, %v112_v11  ;;  %v549_v14 = vpack.c.bf16 %v504_v9, %v112_v11  ;;  %v560_v15 = vpack.i.bf16 %v501_v8, %v102_v10 }
  0xdf   :  { %561 = vrot.lane.b32.xlu0 %v560_v15, %s570_s0 }
  0xe3   :  { %566 = vrot.lane.b32.xlu0 %v565_v13, %s570_s0 }
 0x151   :  { %v562_v16 = vpop.permute.xlu0 %561 }
 0x152   :  { %v564_v17 = vunpack.i.h.bf16 %v562_v16  ;;  %v563_v18 = vunpack.i.l.bf16 %v562_v16 }
 0x154   :  { %v537_v19 = vpack.c.bf16 %v564_v17, %v563_v18 }
 0x155   :  { %v567_v20 = vpop.permute.xlu0 %566 }
 0x156   :  { %v569_v21 = vunpack.i.h.bf16 %v567_v20  ;;  %v568_v22 = vunpack.i.l.bf16 %v567_v20  ;;  %538 = vmatprep.subr.bf16.mxu1 %v537_v19 }
 0x157   :  { %540 = vmatpush3.bf16.msra.mxu1 %v537_v19 }
 0x158   :  { %v545_v24 = vpack.c.bf16 %v569_v21, %v568_v22  ;;  %542 = vmatprep.subr.bf16.mxu1 %v541_v12 }
 0x15a   :  { %510 = vmatmul.mubr.msk.f32.vlgmr.msra.gmra.mrb[2].mxu1 %vm23_vm0, %v124_v23  ;;  %546 = vmatprep.subr.bf16.mxu0 %v545_v24 }
 0x15b   :  { %544 = vmatpush3.bf16.msra.mxu1 %v541_v12  ;;  %548 = vmatpush3.bf16.msra.mxu0 %v545_v24 }
 0x15c   :  { %550 = vmatprep.subr.bf16.mxu0 %v549_v14  ;;  %516 = vmatprep.mubr.msk.f32.mxu1 %vm23_vm0, %v121_v25 }
 0x15e   :  { %524 = vmatmul.mubr.msk.f32.vlgmr.msra.gmra.mrb[2].mxu0 %vm23_vm0, %v124_v23 }
 0x15f   :  { %552 = vmatpush3.bf16.msra.mxu0 %v549_v14  ;;  %530 = vmatprep.mubr.msk.f32.mxu0 %vm23_vm0, %v121_v25 }
 0x162   :  { %517 = vmatmul.mubr.msk.f32.vlgmr.msra.gmra.mrb[2].mxu1 %vm23_vm0, %v122_v26 }
 0x166   :  { %531 = vmatmul.mubr.msk.f32.vlgmr.msra.gmra.mrb[2].mxu0 %vm23_vm0, %v122_v26 }
 0x235   :  { %v518_v27 = vpop.f32.mrb[2].mxu1 }
 0x236   :  { %296 = vst.msk [vmem:[%s658_s4 + $0x8] sm:$0xff] %vm23_vm0, %v518_v27  ;;  %v286_v28 = vpop.f32.mrb[3].mxu1 }
 0x237   :  { %295 = vst.msk [vmem:[%s658_s4] sm:$0xff] %vm23_vm0, %v286_v28 }
 0x239   :  { %v532_v29 = vpop.f32.mrb[2].mxu0 }
 0x23a   :  { %456 = vst.msk [vmem:[%s658_s4 + $0x18] sm:$0xff] %vm23_vm0, %v532_v29  ;;  %v446_v30 = vpop.f32.mrb[3].mxu0 }
 0x23b   :  { %455 = vst.msk [vmem:[%s658_s4 + $0x10] sm:$0xff] %vm23_vm0, %v446_v30 }

</bundles_post_ra>
